<compile_context>
chip_gen: v7x
topology: tpu7x:2x2x1
jax: 0.10.0
libtpu: 0.0.40
codegen_flags: <defaults>
</compile_context>

<pallas_src>
import functools
import math

import jax
import jax.numpy as jnp
from jax import lax
from jax.experimental import pallas as pl
from jax.experimental.pallas import tpu as pltpu


# -----------------------------------------------------------------------------
# Fused kernel: depthwise 3x3 (zero-pad 1) -> pointwise 1x1, per batch block.
# -----------------------------------------------------------------------------
def _dwpw_kernel(x_ref, wd_ref, wpt_ref, bias_ref, mask_ref, o_ref, *, H, W, Nb):
    # x_ref   : (Nb, Cin, H*W)   NCHW input, spatial flattened onto lanes
    # wd_ref  : (9, Cin, 1)      depthwise taps, tap-major (per-channel scalars)
    # wpt_ref : (Cout, Cin)      pointwise weight, canonical (M, K) for the MXU
    # bias_ref: (Cout, 1)        folded bias  (wp @ bd + bp)
    # mask_ref: (9, 1, H*W)      0/1 zero-padding border masks per tap
    # o_ref   : (Nb, Cout, H*W)  lane-dense output block
    HW = H * W
    wd = wd_ref[...]            # hoisted tiny weight/bias/mask loads
    wpt = wpt_ref[...]
    bias = bias_ref[...]
    mask = mask_ref[...]

    for b in range(Nb):                               # static unroll over images
        xb = x_ref[b].astype(jnp.float32)             # (Cin, HW): C on sublanes

        # ---- depthwise 3x3: lane rolls (XLU) + masked MACs (VPU) -------------
        acc = jnp.zeros(xb.shape, jnp.float32)
        for dy in (-1, 0, 1):
            for dx in (-1, 0, 1):
                t = (dy + 1) * 3 + (dx + 1)
                off = dy * W + dx
                shifted = xb if off == 0 else pltpu.roll(
                    xb, shift=(-off) % HW, axis=1)
                # mask[t]: (1, HW) zero-padding mask; wd[t]: (Cin, 1) tap weight
                acc = acc + shifted * mask[t] * wd[t]

        # ---- pointwise 1x1: one canonical MXU matmul, f32 accumulation -------
        y = lax.dot_general(wpt, acc,
                            dimension_numbers=(((1,), (0,)), ((), ())),
                            preferred_element_type=jnp.float32)
        o_ref[b] = (y + bias).astype(o_ref.dtype)     # unmasked 256-lane stores


# -----------------------------------------------------------------------------
# Wrapper (PyTorch NCHW in / NCHW out, PyTorch weight layouts)
# -----------------------------------------------------------------------------
def _pick_batch_block(n):
    # Batch several images per grid step (amortize step overhead), but keep
    # >= 2 grid steps when N >= 2 so both v7x TensorCores get work.
    for nb in (8, 4, 2, 1):
        if n % nb == 0 and (n // nb >= 2 or nb == 1):
            return nb
    return 1


def deepwise_pointwise_conv(x_nchw, params):
    dw_w = params["dw_weight"]          # (Cin, 1, 3, 3)   depth_conv.weight
    dw_b = params["dw_bias"]            # (Cin,)           depth_conv.bias
    pw_w = params["pw_weight"]          # (Cout, Cin, 1, 1) point_conv.weight
    pw_b = params["pw_bias"]            # (Cout,)          point_conv.bias

    N, Cin, H, W = x_nchw.shape
    Cout = pw_w.shape[0]
    HW = H * W

    # NCHW is already channels-first: only a FREE contiguous reshape is needed.
    x_flat = x_nchw.reshape(N, Cin, HW)

    # One-time tiny parameter prep (outside the kernel):
    wd = dw_w.reshape(Cin, 9).T.reshape(9, Cin, 1)            # tap-major taps
    wpt = pw_w.reshape(Cout, Cin)                             # canonical (M, K)
    bias = (wpt @ dw_b + pw_b).reshape(Cout, 1)               # fold dw bias

    # Precomputed 0/1 zero-padding masks per tap (constant-folded by XLA).
    hh = jnp.arange(H).reshape(H, 1)
    ww = jnp.arange(W).reshape(1, W)
    masks = []
    for dy in (-1, 0, 1):
        for dx in (-1, 0, 1):
            m = ((hh + dy >= 0) & (hh + dy < H) &
                 (ww + dx >= 0) & (ww + dx < W))
            masks.append(m.reshape(1, HW))
    tap_mask = jnp.stack(masks, axis=0).astype(jnp.float32)   # (9, 1, HW)

    nb = _pick_batch_block(N)
    grid = (N // nb,)

    kernel = functools.partial(_dwpw_kernel, H=H, W=W, Nb=nb)
    out = pl.pallas_call(
        kernel,
        out_shape=jax.ShapeDtypeStruct((N, Cout, HW), x_nchw.dtype),
        grid=grid,
        in_specs=[
            pl.BlockSpec((nb, Cin, HW), lambda n: (n, 0, 0)),
            pl.BlockSpec((9, Cin, 1), lambda n: (0, 0, 0)),
            pl.BlockSpec((Cout, Cin), lambda n: (0, 0)),
            pl.BlockSpec((Cout, 1), lambda n: (0, 0)),
            pl.BlockSpec((9, 1, HW), lambda n: (0, 0, 0)),
        ],
        out_specs=pl.BlockSpec((nb, Cout, HW), lambda n: (n, 0, 0)),
        compiler_params=pltpu.CompilerParams(
            dimension_semantics=("parallel",)),
    )(x_flat, wd, wpt, bias, tap_mask)

    return out.reshape(N, Cout, H, W)                 # free reshape -> NCHW


# -----------------------------------------------------------------------------
# Pure-JAX reference (independent of the Pallas indexing) for self-validation
# -----------------------------------------------------------------------------
def _reference_nchw(x, params):
    Cin = x.shape[1]
    dw = lax.conv_general_dilated(
        x, params["dw_weight"], window_strides=(1, 1),
        padding=((1, 1), (1, 1)),
        dimension_numbers=("NCHW", "OIHW", "NCHW"),
        feature_group_count=Cin, precision=lax.Precision.HIGHEST)
    dw = dw + params["dw_bias"].reshape(1, Cin, 1, 1)
    pw = lax.conv_general_dilated(
        dw, params["pw_weight"], window_strides=(1, 1),
        padding=((0, 0), (0, 0)),
        dimension_numbers=("NCHW", "OIHW", "NCHW"),
        precision=lax.Precision.HIGHEST)
    return pw + params["pw_bias"].reshape(1, -1, 1, 1)


# -----------------------------------------------------------------------------
if __name__ == "__main__":
    N, Cin, Cout, H, W = 2, 4, 8, 16, 16

    key = jax.random.PRNGKey(0)
    kx, k1, k2, k3, k4 = jax.random.split(key, 5)

    x = jax.random.normal(kx, (N, Cin, H, W), jnp.float32)          # NCHW
    params = {
        "dw_weight": jax.random.normal(k1, (Cin, 1, 3, 3), jnp.float32) / 3.0,
        "dw_bias": jax.random.normal(k2, (Cin,), jnp.float32) * 0.1,
        "pw_weight": jax.random.normal(k3, (Cout, Cin, 1, 1), jnp.float32)
                     / math.sqrt(Cin),
        "pw_bias": jax.random.normal(k4, (Cout,), jnp.float32) * 0.1,
    }

    fwd = jax.jit(deepwise_pointwise_conv)
    out = jax.block_until_ready(fwd(x, params))

    assert out.shape == (N, Cout, H, W)
    assert bool(jnp.all(jnp.isfinite(out)))

    ref = _reference_nchw(x, params)
    max_err = float(jnp.max(jnp.abs(out - ref)))
    assert max_err < 1e-3, f"mismatch vs reference: max_err={max_err}"

    print("KERNEL_OK")
</pallas_src>

<mosaic_0001>
module attributes {stable_mosaic.version = 11 : i64} {
  func.func @_dwpw_kernel(%arg0: i32, %arg1: memref<1x4x256xf32, #tpu.memory_space<vmem>>, %arg2: memref<9x4x1xf32, #tpu.memory_space<vmem>>, %arg3: memref<8x4xf32, #tpu.memory_space<vmem>>, %arg4: memref<8x1xf32, #tpu.memory_space<vmem>>, %arg5: memref<9x1x256xf32, #tpu.memory_space<vmem>>, %arg6: memref<1x8x256xf32, #tpu.memory_space<vmem>>) attributes {dimension_semantics = [#tpu.dimension_semantics<parallel>], iteration_bounds = array<i64: 2>, scalar_prefetch = 0 : i64, scratch_operands = 0 : i64, tpu.core_type = #tpu.core_type<tc>, window_params = [{transform_indices = @transform_0, window_bounds = array<i64: 1, 4, 256>}, {pipeline_mode = #tpu.pipeline_mode<synchronous>, transform_indices = @transform_1, window_bounds = array<i64: 9, 4, 1>}, {pipeline_mode = #tpu.pipeline_mode<synchronous>, transform_indices = @transform_2, window_bounds = array<i64: 8, 4>}, {pipeline_mode = #tpu.pipeline_mode<synchronous>, transform_indices = @transform_3, window_bounds = array<i64: 8, 1>}, {pipeline_mode = #tpu.pipeline_mode<synchronous>, transform_indices = @transform_4, window_bounds = array<i64: 9, 1, 256>}, {transform_indices = @transform_5, window_bounds = array<i64: 1, 8, 256>}]} {
    %c0 = arith.constant 0 : index
    %c0_0 = arith.constant 0 : index
    %c0_1 = arith.constant 0 : index
    %0 = vector.load %arg2[%c0, %c0_0, %c0_1] : memref<9x4x1xf32, #tpu.memory_space<vmem>>, vector<9x4x1xf32>
    %c0_2 = arith.constant 0 : index
    %c0_3 = arith.constant 0 : index
    %1 = vector.load %arg3[%c0_2, %c0_3] : memref<8x4xf32, #tpu.memory_space<vmem>>, vector<8x4xf32>
    %c0_4 = arith.constant 0 : index
    %c0_5 = arith.constant 0 : index
    %2 = vector.load %arg4[%c0_4, %c0_5] : memref<8x1xf32, #tpu.memory_space<vmem>>, vector<8x1xf32>
    %c0_6 = arith.constant 0 : index
    %c0_7 = arith.constant 0 : index
    %c0_8 = arith.constant 0 : index
    %3 = vector.load %arg5[%c0_6, %c0_7, %c0_8] : memref<9x1x256xf32, #tpu.memory_space<vmem>>, vector<9x1x256xf32>
    %c0_9 = arith.constant 0 : index
    %c0_10 = arith.constant 0 : index
    %c0_11 = arith.constant 0 : index
    %4 = vector.load %arg1[%c0_9, %c0_10, %c0_11] : memref<1x4x256xf32, #tpu.memory_space<vmem>>, vector<1x4x256xf32>
    %5 = vector.shape_cast %4 : vector<1x4x256xf32> to vector<4x256xf32>
    %cst = arith.constant 0.000000e+00 : f32
    %6 = vector.broadcast %cst : f32 to vector<4x256xf32>
    %c17_i32 = arith.constant 17 : i32
    %7 = tpu.dynamic_rotate %5 by %c17_i32 dim 1 : vector<4x256xf32>, i32 -> vector<4x256xf32>
    %8 = vector.extract_strided_slice %3 {offsets = [0, 0, 0], sizes = [1, 1, 256], strides = [1, 1, 1]} : vector<9x1x256xf32> to vector<1x1x256xf32>
    %9 = vector.shape_cast %8 : vector<1x1x256xf32> to vector<1x256xf32>
    %10 = vector.broadcast %9 : vector<1x256xf32> to vector<4x256xf32>
    %11 = arith.mulf %7, %10 : vector<4x256xf32>
    %12 = vector.extract_strided_slice %0 {offsets = [0, 0, 0], sizes = [1, 4, 1], strides = [1, 1, 1]} : vector<9x4x1xf32> to vector<1x4x1xf32>
    %13 = vector.shape_cast %12 : vector<1x4x1xf32> to vector<4x1xf32>
    %14 = vector.broadcast %13 : vector<4x1xf32> to vector<4x256xf32>
    %15 = arith.mulf %11, %14 : vector<4x256xf32>
    %16 = arith.addf %6, %15 : vector<4x256xf32>
    %c16_i32 = arith.constant 16 : i32
    %17 = tpu.dynamic_rotate %5 by %c16_i32 dim 1 : vector<4x256xf32>, i32 -> vector<4x256xf32>
    %18 = vector.extract_strided_slice %3 {offsets = [1, 0, 0], sizes = [1, 1, 256], strides = [1, 1, 1]} : vector<9x1x256xf32> to vector<1x1x256xf32>
    %19 = vector.shape_cast %18 : vector<1x1x256xf32> to vector<1x256xf32>
    %20 = vector.broadcast %19 : vector<1x256xf32> to vector<4x256xf32>
    %21 = arith.mulf %17, %20 : vector<4x256xf32>
    %22 = vector.extract_strided_slice %0 {offsets = [1, 0, 0], sizes = [1, 4, 1], strides = [1, 1, 1]} : vector<9x4x1xf32> to vector<1x4x1xf32>
    %23 = vector.shape_cast %22 : vector<1x4x1xf32> to vector<4x1xf32>
    %24 = vector.broadcast %23 : vector<4x1xf32> to vector<4x256xf32>
    %25 = arith.mulf %21, %24 : vector<4x256xf32>
    %26 = arith.addf %16, %25 : vector<4x256xf32>
    %c15_i32 = arith.constant 15 : i32
    %27 = tpu.dynamic_rotate %5 by %c15_i32 dim 1 : vector<4x256xf32>, i32 -> vector<4x256xf32>
    %28 = vector.extract_strided_slice %3 {offsets = [2, 0, 0], sizes = [1, 1, 256], strides = [1, 1, 1]} : vector<9x1x256xf32> to vector<1x1x256xf32>
    %29 = vector.shape_cast %28 : vector<1x1x256xf32> to vector<1x256xf32>
    %30 = vector.broadcast %29 : vector<1x256xf32> to vector<4x256xf32>
    %31 = arith.mulf %27, %30 : vector<4x256xf32>
    %32 = vector.extract_strided_slice %0 {offsets = [2, 0, 0], sizes = [1, 4, 1], strides = [1, 1, 1]} : vector<9x4x1xf32> to vector<1x4x1xf32>
    %33 = vector.shape_cast %32 : vector<1x4x1xf32> to vector<4x1xf32>
    %34 = vector.broadcast %33 : vector<4x1xf32> to vector<4x256xf32>
    %35 = arith.mulf %31, %34 : vector<4x256xf32>
    %36 = arith.addf %26, %35 : vector<4x256xf32>
    %c1_i32 = arith.constant 1 : i32
    %37 = tpu.dynamic_rotate %5 by %c1_i32 dim 1 : vector<4x256xf32>, i32 -> vector<4x256xf32>
    %38 = vector.extract_strided_slice %3 {offsets = [3, 0, 0], sizes = [1, 1, 256], strides = [1, 1, 1]} : vector<9x1x256xf32> to vector<1x1x256xf32>
    %39 = vector.shape_cast %38 : vector<1x1x256xf32> to vector<1x256xf32>
    %40 = vector.broadcast %39 : vector<1x256xf32> to vector<4x256xf32>
    %41 = arith.mulf %37, %40 : vector<4x256xf32>
    %42 = vector.extract_strided_slice %0 {offsets = [3, 0, 0], sizes = [1, 4, 1], strides = [1, 1, 1]} : vector<9x4x1xf32> to vector<1x4x1xf32>
    %43 = vector.shape_cast %42 : vector<1x4x1xf32> to vector<4x1xf32>
    %44 = vector.broadcast %43 : vector<4x1xf32> to vector<4x256xf32>
    %45 = arith.mulf %41, %44 : vector<4x256xf32>
    %46 = arith.addf %36, %45 : vector<4x256xf32>
    %47 = vector.extract_strided_slice %3 {offsets = [4, 0, 0], sizes = [1, 1, 256], strides = [1, 1, 1]} : vector<9x1x256xf32> to vector<1x1x256xf32>
    %48 = vector.shape_cast %47 : vector<1x1x256xf32> to vector<1x256xf32>
    %49 = vector.broadcast %48 : vector<1x256xf32> to vector<4x256xf32>
    %50 = arith.mulf %5, %49 : vector<4x256xf32>
    %51 = vector.extract_strided_slice %0 {offsets = [4, 0, 0], sizes = [1, 4, 1], strides = [1, 1, 1]} : vector<9x4x1xf32> to vector<1x4x1xf32>
    %52 = vector.shape_cast %51 : vector<1x4x1xf32> to vector<4x1xf32>
    %53 = vector.broadcast %52 : vector<4x1xf32> to vector<4x256xf32>
    %54 = arith.mulf %50, %53 : vector<4x256xf32>
    %55 = arith.addf %46, %54 : vector<4x256xf32>
    %c255_i32 = arith.constant 255 : i32
    %56 = tpu.dynamic_rotate %5 by %c255_i32 dim 1 : vector<4x256xf32>, i32 -> vector<4x256xf32>
    %57 = vector.extract_strided_slice %3 {offsets = [5, 0, 0], sizes = [1, 1, 256], strides = [1, 1, 1]} : vector<9x1x256xf32> to vector<1x1x256xf32>
    %58 = vector.shape_cast %57 : vector<1x1x256xf32> to vector<1x256xf32>
    %59 = vector.broadcast %58 : vector<1x256xf32> to vector<4x256xf32>
    %60 = arith.mulf %56, %59 : vector<4x256xf32>
    %61 = vector.extract_strided_slice %0 {offsets = [5, 0, 0], sizes = [1, 4, 1], strides = [1, 1, 1]} : vector<9x4x1xf32> to vector<1x4x1xf32>
    %62 = vector.shape_cast %61 : vector<1x4x1xf32> to vector<4x1xf32>
    %63 = vector.broadcast %62 : vector<4x1xf32> to vector<4x256xf32>
    %64 = arith.mulf %60, %63 : vector<4x256xf32>
    %65 = arith.addf %55, %64 : vector<4x256xf32>
    %c241_i32 = arith.constant 241 : i32
    %66 = tpu.dynamic_rotate %5 by %c241_i32 dim 1 : vector<4x256xf32>, i32 -> vector<4x256xf32>
    %67 = vector.extract_strided_slice %3 {offsets = [6, 0, 0], sizes = [1, 1, 256], strides = [1, 1, 1]} : vector<9x1x256xf32> to vector<1x1x256xf32>
    %68 = vector.shape_cast %67 : vector<1x1x256xf32> to vector<1x256xf32>
    %69 = vector.broadcast %68 : vector<1x256xf32> to vector<4x256xf32>
    %70 = arith.mulf %66, %69 : vector<4x256xf32>
    %71 = vector.extract_strided_slice %0 {offsets = [6, 0, 0], sizes = [1, 4, 1], strides = [1, 1, 1]} : vector<9x4x1xf32> to vector<1x4x1xf32>
    %72 = vector.shape_cast %71 : vector<1x4x1xf32> to vector<4x1xf32>
    %73 = vector.broadcast %72 : vector<4x1xf32> to vector<4x256xf32>
    %74 = arith.mulf %70, %73 : vector<4x256xf32>
    %75 = arith.addf %65, %74 : vector<4x256xf32>
    %c240_i32 = arith.constant 240 : i32
    %76 = tpu.dynamic_rotate %5 by %c240_i32 dim 1 : vector<4x256xf32>, i32 -> vector<4x256xf32>
    %77 = vector.extract_strided_slice %3 {offsets = [7, 0, 0], sizes = [1, 1, 256], strides = [1, 1, 1]} : vector<9x1x256xf32> to vector<1x1x256xf32>
    %78 = vector.shape_cast %77 : vector<1x1x256xf32> to vector<1x256xf32>
    %79 = vector.broadcast %78 : vector<1x256xf32> to vector<4x256xf32>
    %80 = arith.mulf %76, %79 : vector<4x256xf32>
    %81 = vector.extract_strided_slice %0 {offsets = [7, 0, 0], sizes = [1, 4, 1], strides = [1, 1, 1]} : vector<9x4x1xf32> to vector<1x4x1xf32>
    %82 = vector.shape_cast %81 : vector<1x4x1xf32> to vector<4x1xf32>
    %83 = vector.broadcast %82 : vector<4x1xf32> to vector<4x256xf32>
    %84 = arith.mulf %80, %83 : vector<4x256xf32>
    %85 = arith.addf %75, %84 : vector<4x256xf32>
    %c239_i32 = arith.constant 239 : i32
    %86 = tpu.dynamic_rotate %5 by %c239_i32 dim 1 : vector<4x256xf32>, i32 -> vector<4x256xf32>
    %87 = vector.extract_strided_slice %3 {offsets = [8, 0, 0], sizes = [1, 1, 256], strides = [1, 1, 1]} : vector<9x1x256xf32> to vector<1x1x256xf32>
    %88 = vector.shape_cast %87 : vector<1x1x256xf32> to vector<1x256xf32>
    %89 = vector.broadcast %88 : vector<1x256xf32> to vector<4x256xf32>
    %90 = arith.mulf %86, %89 : vector<4x256xf32>
    %91 = vector.extract_strided_slice %0 {offsets = [8, 0, 0], sizes = [1, 4, 1], strides = [1, 1, 1]} : vector<9x4x1xf32> to vector<1x4x1xf32>
    %92 = vector.shape_cast %91 : vector<1x4x1xf32> to vector<4x1xf32>
    %93 = vector.broadcast %92 : vector<4x1xf32> to vector<4x256xf32>
    %94 = arith.mulf %90, %93 : vector<4x256xf32>
    %95 = arith.addf %85, %94 : vector<4x256xf32>
    %cst_12 = arith.constant dense<0.000000e+00> : vector<8x256xf32>
    %96 = tpu.matmul %1, %95, %cst_12 {dimension_numbers = #tpu.dot_dimension_numbers<[1], [0], [0], [1], [0, 0, 1, 1], [], []>} : vector<8x4xf32>, vector<4x256xf32>, vector<8x256xf32> -> vector<8x256xf32>
    %97 = vector.broadcast %2 : vector<8x1xf32> to vector<8x256xf32>
    %98 = arith.addf %96, %97 : vector<8x256xf32>
    %c0_13 = arith.constant 0 : index
    %c0_14 = arith.constant 0 : index
    %c0_15 = arith.constant 0 : index
    %99 = vector.load %arg6[%c0_13, %c0_14, %c0_15] : memref<1x8x256xf32, #tpu.memory_space<vmem>>, vector<1x8x256xf32>
    %100 = vector.shape_cast %99 : vector<1x8x256xf32> to vector<8x256xf32>
    %101 = vector.shape_cast %98 : vector<8x256xf32> to vector<1x8x256xf32>
    tpu.vector_store %arg6[%c0_13, %c0_14, %c0_15], %101 {strides = array<i32>} : memref<1x8x256xf32, #tpu.memory_space<vmem>>, vector<1x8x256xf32>,
    return
  }
  func.func @transform_0(%arg0: i32) -> (i32, i32, i32) {
    %c0_i32 = arith.constant 0 : i32
    %c0_i32_0 = arith.constant 0 : i32
    %c0_i32_1 = arith.constant 0 : i32
    return %arg0, %c0_i32, %c0_i32_0 : i32, i32, i32
  }
  func.func @transform_1(%arg0: i32) -> (i32, i32, i32) {
    %c0_i32 = arith.constant 0 : i32
    %c0_i32_0 = arith.constant 0 : i32
    %c0_i32_1 = arith.constant 0 : i32
    %c0_i32_2 = arith.constant 0 : i32
    return %c0_i32, %c0_i32_0, %c0_i32_1 : i32, i32, i32
  }
  func.func @transform_2(%arg0: i32) -> (i32, i32) {
    %c0_i32 = arith.constant 0 : i32
    %c0_i32_0 = arith.constant 0 : i32
    %c0_i32_1 = arith.constant 0 : i32
    return %c0_i32, %c0_i32_0 : i32, i32
  }
  func.func @transform_3(%arg0: i32) -> (i32, i32) {
    %c0_i32 = arith.constant 0 : i32
    %c0_i32_0 = arith.constant 0 : i32
    %c0_i32_1 = arith.constant 0 : i32
    return %c0_i32, %c0_i32_0 : i32, i32
  }
  func.func @transform_4(%arg0: i32) -> (i32, i32, i32) {
    %c0_i32 = arith.constant 0 : i32
    %c0_i32_0 = arith.constant 0 : i32
    %c0_i32_1 = arith.constant 0 : i32
    %c0_i32_2 = arith.constant 0 : i32
    return %c0_i32, %c0_i32_0, %c0_i32_1 : i32, i32, i32
  }
  func.func @transform_5(%arg0: i32) -> (i32, i32, i32) {
    %c0_i32 = arith.constant 0 : i32
    %c0_i32_0 = arith.constant 0 : i32
    %c0_i32_1 = arith.constant 0 : i32
    return %arg0, %c0_i32, %c0_i32_0 : i32, i32, i32
  }
}

</mosaic_0001>

<bundles_post_ra>
// kernel: deepwise_pointwise_conv.1
= control target key start
LH: loop header
LB: loop body
LE: loop exit
PB: predicated region body
PF: predicated region fallthrough
CT: control target
= control target key end

     0   :  { %s744_s18 = smov 0   ;;  %s901_s0 = inlined_call_operand.vmem [shape: f32[2,4,256], index: 0, kind: input, shape index: {}]   ;;  %s902_s1 = inlined_call_operand.vmem [shape: f32[9,4,1], index: 1, kind: input, shape index: {}]   ;;  %s903_s2 = inlined_call_operand.vmem [shape: f32[8,4], index: 2, kind: input, shape index: {}]   ;;  %s904_s3 = inlined_call_operand.vmem [shape: f32[8,1], index: 3, kind: input, shape index: {}]   ;;  %s905_s4 = inlined_call_operand.vmem [shape: f32[9,1,256], index: 4, kind: input, shape index: {}]   ;;  %s906_s5 = inlined_call_operand.vmem [shape: f32[2,8,256], index: 5, kind: output, shape index: {}]  }
   0x1 LB: > { %s657_s19 = sadd.s32 4294967295, %s701_s18   ;;  %p661_p0 = scmp.ge.s32.totalorder %s701_s18, 1  ;;  %s701_s18 = sphi %s744_s18, %s15_s18  }
   0x2   : > { %p187_p1 = scmp.lt.s32.totalorder %s701_s18, 3 }
   0x4   : > { %p188_p2 = pnand %p661_p0, %p187_p1 }
   0x5   : > { %v227_v0 = vld [vmem:[%s902_s1 + $0x8] sm:$0xf] (!%p188_p2)  ;;  %v225_v1 = vld [vmem:[%s902_s1] sm:$0xf] (!%p188_p2)  ;;  %p215_p3 = scmp.lt.s32.totalorder (!%p188_p2), %s657_s19, 1  ;;  %v703_v2 = vmov (!%p188_p2), 0   ;;  %v253_v20 = vlaneseq (!%p188_p2) }
   0x6   : > { %191 = sbr.rel (%p188_p2) target bundleno = 410 (0x19a), region = 40  ;;  %693 = vset.pattern.permute.xlu1 (!%p188_p2), %v703_v2  ;;  %692 = vset.pattern.permute.xlu0 (!%p188_p2), %v703_v2  ;;  %v229_v3 = vld [vmem:[%s902_s1 + $0x10] sm:$0xf] (!%p188_p2)  ;;  %v226_v4 = vld [vmem:[%s902_s1 + $0x4] sm:$0xf] (!%p188_p2)  ;;  %s704_s7 = smov (!%p188_p2), 17  }
   0x7   : > { %331 = vperm.xlu1 (!%p188_p2), %693, %v227_v0   ;;  %273 = vperm.xlu0 (!%p188_p2), %692, %v225_v1   ;;  %s705_s8 = smov (!%p188_p2), 16   ;;  %v228_v7 = vld [vmem:[%s902_s1 + $0xc] sm:$0xf] (!%p188_p2)  ;;  %s706_s11 = smov (!%p188_p2), 15   ;;  %v230_v8 = vld [vmem:[%s902_s1 + $0x14] sm:$0xf] (!%p188_p2) }
   0x8   : > { %s707_s12 = smov (!%p188_p2), 1   ;;  %v231_v9 = vld [vmem:[%s902_s1 + $0x18] sm:$0xf] (!%p188_p2)  ;;  %s708_s17 = smov (!%p188_p2), 127   ;;  %v232_v10 = vld [vmem:[%s902_s1 + $0x1c] sm:$0xf] (!%p188_p2) }
   0x9   : > { %s709_s22 = smov (!%p188_p2), 113   ;;  %v233_v11 = vld [vmem:[%s902_s1 + $0x20] sm:$0xf] (!%p188_p2)  ;;  %s710_s25 = smov (!%p188_p2), 112   ;;  %v712_v13 = vmov (!%p188_p2), 0.0   ;;  %v260_v23 = vshrl.u32 (!%p188_p2), %v253_v20, 7 }
   0xa   : > { %s711_s26 = smov (!%p188_p2), 111   ;;  %v235_v12 = vld [vmem:[%s904_s3] sm:$0xff] (!%p188_p2)  ;;  %593 = vmatprep.mubr.f32.mxu0 (!%p188_p2), %v712_v13  ;;  %v713_v26 = vmov (!%p188_p2), 839922192   ;;  %v808_v28 = vand.u32 (!%p188_p2), 127, %v253_v20  ;;  %vm522_vm8 = vcmask (!%p188_p2), 1043456  }
   0xb   : > { %381 = vperm.xlu1 (!%p188_p2), %693, %v229_v3   ;;  %302 = vperm.xlu0 (!%p188_p2), %692, %v226_v4   ;;  %v384_v27 = vunpack.c.l.s4 (!%p188_p2), %v713_v26  ;;  %v810_v29 = vsub.s32 (!%p188_p2), 0, %v260_v23  ;;  %v240_v32 = vld [vmem:[%s905_s4 + $0x8] sm:$0x3] (!%p188_p2)  ;;  %v815_v33 = vsub.s32 (!%p188_p2), 1, %v260_v23  ;;  %v237_v34 = vld [vmem:[%s905_s4 + $0x2] sm:$0x3] (!%p188_p2) }
   0xc   : > { %vm284_vm0 = vcmp.lt.s32.totalorder (!%p188_p2), %v808_v28, 16  ;;  %v236_v36 = vld [vmem:[%s905_s4] sm:$0x3] (!%p188_p2)  ;;  %v238_v37 = vld [vmem:[%s905_s4 + $0x4] sm:$0x3] (!%p188_p2)  ;;  %vm255_vm1 = vcmp.lt.s32.totalorder (!%p188_p2), %v808_v28, 17 }
   0xd   : > { %s908_s19 = smov (!%p215_p3, %s657_s19), 1  ;;  %v385_v35 = vunpack.c.0.s8 %v384_v27  ;;  %v371_v38 = vrot.slane %v240_v32, %v810_v29  ;;  %v291_v39 = vrot.slane %v237_v34, %v810_v29  ;;  %v295_v40 = vrot.slane %v237_v34, %v815_v33  ;;  %v239_v49 = vld [vmem:[%s905_s4 + $0x6] sm:$0x3] }
   0xe   : > { %s671_s28 = sshll.u32 %s908_s19, 3  ;;  %v375_v43 = vrot.slane %v240_v32, %v815_v33  ;;  %vm313_vm2 = vcmp.lt.s32.totalorder %v808_v28, 15  ;;  %v262_v46 = vrot.slane %v236_v36, %v810_v29  ;;  %v266_v47 = vrot.slane %v236_v36, %v815_v33 }
   0xf   : > { %s219_s6 = scalar_lea.vmem %s901_s0, %s671_s28  ;;  %v320_v48 = vrot.slane %v238_v37, %v810_v29  ;;  %v324_v52 = vrot.slane %v238_v37, %v815_v33  ;;  %vm342_vm3 = vcmp.lt.s32.totalorder %v808_v28, 1  ;;  %v388_v60 = vsub.s32 %v385_v35, %v260_v23 }
  0x10   : > { %v770_v5 = vld [vmem:[%s219_s6] sm:$0xff]  ;;  %v376_v59 = vcombine.low %v371_v38, %v375_v43  ;;  %v349_v61 = vrot.slane %v239_v49, %v810_v29  ;;  %v353_v62 = vrot.slane %v239_v49, %v815_v33  ;;  %vm401_vm4 = vcmp.lt.s32.totalorder %v808_v28, 127 }
  0x11   : > { %v247_v6 = vcombine.high %v770_v5, %v770_v5  ;;  %249 = vrot.lane.b32.xlu0 %v770_v5, %s704_s7  ;;  %vm430_vm5 = vcmp.lt.s32.totalorder %v808_v28, 113  ;;  %vm459_vm6 = vcmp.lt.s32.totalorder %v808_v28, 112  ;;  %vm488_vm7 = vcmp.lt.s32.totalorder %v808_v28, 111 }
  0x12   : > { %vm518_vm9 = vcmask 31744  }
  0x13   : > { %251 = vrot.lane.b32.xlu1 %v247_v6, %s704_s7 }
  0x15   : > { %280 = vrot.lane.b32.xlu0 %v770_v5, %s705_s8 }
  0x17   : > { %282 = vrot.lane.b32.xlu1 %v247_v6, %s705_s8 }
  0x19   : > { %360 = vperm.xlu0 %692, %v228_v7  }
  0x1b   : > { %309 = vrot.lane.b32.xlu1 %v770_v5, %s706_s11 }
  0x1d   : > { %311 = vrot.lane.b32.xlu0 %v247_v6, %s706_s11 }
  0x1f   : > { %338 = vrot.lane.b32.xlu1 %v770_v5, %s707_s12 }
  0x21   : > { %340 = vrot.lane.b32.xlu0 %v247_v6, %s707_s12 }
  0x23   : > { %419 = vperm.xlu1 %693, %v230_v8   ;;  %v241_v8 = vld [vmem:[%s905_s4 + $0xa] sm:$0x3] }
  0x25   : > { %448 = vperm.xlu0 %692, %v231_v9  }
  0x27   : > { %397 = vrot.lane.b32.xlu1 %v770_v5, %s708_s17 }
  0x29   : > { %399 = vrot.lane.b32.xlu0 %v247_v6, %s708_s17 }
  0x2b   : > { %477 = vperm.xlu1 %693, %v232_v10  }
  0x2d   : > { %426 = vrot.lane.b32.xlu0 %v770_v5, %s709_s22 }
  0x2f   : > { %428 = vrot.lane.b32.xlu1 %v247_v6, %s709_s22 }
  0x31   : > { %506 = vperm.xlu0 %692, %v233_v11   ;;  %v378_v11 = vmul.f32 %v376_v59, %v770_v5 }
  0x33   : > { %455 = vrot.lane.b32.xlu1 %v770_v5, %s710_s25 }
  0x35   : > { %457 = vrot.lane.b32.xlu0 %v247_v6, %s710_s25 }
  0x37   : > { %484 = vrot.lane.b32.xlu1 %v770_v5, %s711_s26  ;;  %v242_v5 = vld [vmem:[%s905_s4 + $0xc] sm:$0x3] }
  0x38   : > { %v437_v34 = vrot.slane %v242_v5, %v810_v29  ;;  %v441_v35 = vrot.slane %v242_v5, %v815_v33 }
  0x39   : > { %486 = vrot.lane.b32.xlu0 %v247_v6, %s711_s26  ;;  %s672_s26 = sshll.u32 %s908_s19, 4 }
  0x3a   : > { %s224_s29 = scalar_lea.vmem %s906_s5, %s672_s26 }
  0x3b   : > { %515 = vperm.xlu1 %693, %v235_v12  }
  0x86   : > { %v800_v14 = vpop.permute.xlu1 %331  ;;  %v802_v15 = vpop.permute.xlu0 %273 }
  0x8a   : > { %v804_v16 = vpop.permute.xlu1 %381  ;;  %v303_v17 = vpop.permute.xlu0 %302 }
  0x8e   : > { %v250_v18 = vpop.permute.xlu0 %249  ;;  %v252_v19 = vpop.permute.xlu1 %251 }
  0x8f   : > { %v256_v50 = vsel %vm255_vm1, %v250_v18, %v252_v19  ;;  %v257_v51 = vsel %vm255_vm1, %v252_v19, %v250_v18  ;;  %v389_v18 = vrot.slane %v804_v16, %v388_v60  ;;  %v412_v16 = vrot.slane %v241_v8, %v815_v33 }
  0x90   : > { %v269_v63 = vmul.f32 %v262_v46, %v257_v51  ;;  %v270_v0 = vmul.f32 %v266_v47, %v256_v50  ;;  %v244_v46 = vld [vmem:[%s905_s4 + $0x10] sm:$0x3] }
  0x91   : > { %v391_v32 = vmul.f32 %v389_v18, %v378_v11 }
  0x92   : > { %v281_v21 = vpop.permute.xlu0 %280  ;;  %v283_v22 = vpop.permute.xlu1 %282  ;;  %v276_v19 = vmul.f32 %v802_v15, %v269_v63  ;;  %v277_v20 = vmul.f32 %v802_v15, %v270_v0 }
  0x93   : > { %v285_v44 = vsel %vm284_vm0, %v281_v21, %v283_v22  ;;  %v286_v45 = vsel %vm284_vm0, %v283_v22, %v281_v21  ;;  %v408_v22 = vrot.slane %v241_v8, %v810_v29 }
  0x94   : > { %v298_v53 = vmul.f32 %v291_v39, %v286_v45  ;;  %v299_v54 = vmul.f32 %v295_v40, %v285_v44  ;;  %v243_v40 = vld [vmem:[%s905_s4 + $0xe] sm:$0x3] }
  0x95   : > { %v466_v50 = vrot.slane %v243_v40, %v810_v29  ;;  %v470_v51 = vrot.slane %v243_v40, %v815_v33 }
  0x96   : > { %v310_v25 = vpop.permute.xlu1 %309  ;;  %v305_v6 = vmul.f32 %v303_v17, %v298_v53  ;;  %v306_v7 = vmul.f32 %v303_v17, %v299_v54 }
  0x98   : > { %v806_v24 = vpop.permute.xlu0 %360  ;;  %v307_v23 = vadd.f32 %v305_v6, %v276_v19 }
  0x9a   : > { %v339_v31 = vpop.permute.xlu1 %338 }
  0x9c   : > { %v312_v30 = vpop.permute.xlu0 %311 }
  0x9d   : > { %v314_v55 = vsel %vm313_vm2, %v310_v25, %v312_v30  ;;  %v315_v56 = vsel %vm313_vm2, %v312_v30, %v310_v25  ;;  %v308_v25 = vadd.f32 %v306_v7, %v277_v20 }
  0x9e   : > { %v327_v3 = vmul.f32 %v320_v48, %v315_v56  ;;  %v328_v4 = vmul.f32 %v324_v52, %v314_v55  ;;  %v393_v52 = vcombine.high %v391_v32, %v391_v32  ;;  %v495_v56 = vrot.slane %v244_v46, %v810_v29 }
  0xa0   : > { %v341_v41 = vpop.permute.xlu0 %340  ;;  %v334_v17 = vmul.f32 %v800_v14, %v327_v3  ;;  %v335_v21 = vmul.f32 %v800_v14, %v328_v4 }
  0xa1   : > { %v343_v1 = vsel %vm342_vm3, %v339_v31, %v341_v41  ;;  %v344_v2 = vsel %vm342_vm3, %v341_v41, %v339_v31 }
  0xa2   : > { %v831_v42 = vpop.permute.xlu1 %419  ;;  %v356_v12 = vmul.f32 %v349_v61, %v344_v2  ;;  %v357_v13 = vmul.f32 %v353_v62, %v343_v1  ;;  %v336_v36 = vadd.f32 %v334_v17, %v307_v23  ;;  %v337_v37 = vadd.f32 %v335_v21, %v308_v25  ;;  %v234_v21 = vld [vmem:[%s903_s2] sm:$0xff] }
  0xa4   : > { %v843_v57 = vpop.permute.xlu0 %448  ;;  %v363_v27 = vmul.f32 %v806_v24, %v356_v12  ;;  %v364_v30 = vmul.f32 %v806_v24, %v357_v13 }
  0xa6   : > { %v398_v58 = vpop.permute.xlu1 %397  ;;  %v365_v45 = vadd.f32 %v363_v27, %v336_v36  ;;  %v366_v24 = vadd.f32 %v364_v30, %v337_v37 }
  0xa8   : > { %v400_v9 = vpop.permute.xlu0 %399  ;;  %v395_v59 = vadd.f32 %v391_v32, %v365_v45  ;;  %v396_v60 = vadd.f32 %v393_v52, %v366_v24 }
  0xa9   : > { %v402_v31 = vsel %vm401_vm4, %v398_v58, %v400_v9  ;;  %v403_v14 = vsel %vm401_vm4, %v400_v9, %v398_v58  ;;  %v499_v58 = vrot.slane %v244_v46, %v815_v33 }
  0xaa   : > { %v478_v10 = vpop.permute.xlu1 %477  ;;  %v415_v41 = vmul.f32 %v408_v22, %v402_v31  ;;  %v416_v43 = vmul.f32 %v412_v16, %v403_v14 }
  0xac   : > { %v427_v26 = vpop.permute.xlu0 %426  ;;  %v422_v53 = vmul.f32 %v831_v42, %v415_v41  ;;  %v423_v54 = vmul.f32 %v831_v42, %v416_v43 }
  0xae   : > { %v429_v15 = vpop.permute.xlu1 %428  ;;  %v424_v42 = vadd.f32 %v422_v53, %v395_v59  ;;  %v425_v3 = vadd.f32 %v423_v54, %v396_v60 }
  0xaf   : > { %v431_v38 = vsel %vm430_vm5, %v427_v26, %v429_v15  ;;  %v432_v39 = vsel %vm430_vm5, %v429_v15, %v427_v26 }
  0xb0   : > { %v507_v44 = vpop.permute.xlu0 %506  ;;  %v444_v47 = vmul.f32 %v437_v34, %v431_v38  ;;  %v445_v48 = vmul.f32 %v441_v35, %v432_v39 }
  0xb2   : > { %v456_v49 = vpop.permute.xlu1 %455  ;;  %v451_v63 = vmul.f32 %v843_v57, %v444_v47  ;;  %v452_v0 = vmul.f32 %v843_v57, %v445_v48 }
  0xb4   : > { %v458_v55 = vpop.permute.xlu0 %457  ;;  %v453_v9 = vadd.f32 %v451_v63, %v424_v42  ;;  %v454_v13 = vadd.f32 %v452_v0, %v425_v3 }
  0xb5   : > { %v460_v61 = vsel %vm459_vm6, %v456_v49, %v458_v55  ;;  %v461_v62 = vsel %vm459_vm6, %v458_v55, %v456_v49 }
  0xb6   : > { %v473_v1 = vmul.f32 %v466_v50, %v460_v61  ;;  %v474_v2 = vmul.f32 %v470_v51, %v461_v62  ;;  %v485_v6 = vpop.permute.xlu1 %484 }
  0xb8   : > { %v480_v4 = vmul.f32 %v478_v10, %v473_v1  ;;  %v481_v29 = vmul.f32 %v478_v10, %v474_v2  ;;  %v487_v33 = vpop.permute.xlu0 %486 }
  0xb9   : > { %v489_v7 = vsel %vm488_vm7, %v485_v6, %v487_v33  ;;  %v490_v8 = vsel %vm488_vm7, %v487_v33, %v485_v6 }
  0xba   : > { %v502_v11 = vmul.f32 %v495_v56, %v489_v7  ;;  %v503_v12 = vmul.f32 %v499_v58, %v490_v8  ;;  %v483_v18 = vadd.f32 %v481_v29, %v454_v13  ;;  %v482_v20 = vadd.f32 %v480_v4, %v453_v9  ;;  %v516_v28 = vpop.permute.xlu1 %515 }
  0xbc   : > { %v509_v57 = vmul.f32 %v507_v44, %v502_v11  ;;  %v510_v19 = vmul.f32 %v507_v44, %v503_v12 }
  0xbe   : > { %v512_v17 = vadd.f32 %v510_v19, %v483_v18  ;;  %v511_v10 = vadd.f32 %v509_v57, %v482_v20 }
  0xc0   : > { %666 = vmatprep.subr.msk.mxu0 %vm522_vm8, %v512_v17 }
  0xc1   : > { %667 = vmatpush1.msk.msra.mxu0 %vm522_vm8, %v511_v10 }
  0xc2   : > { %668 = vmatmul.mubr.msk.f32.vlgmr.msra.gmra.mrb[0].mxu0 %vm518_vm9, %v234_v21 }
 0x195   : > { %v595_v22 = vpop.f32.mrb[0].mxu0 }
 0x196   : > { %v596_v5 = vadd.f32 %v595_v22, %v516_v28  ;;  %v597_v23 = vpop.f32.mrb[1].mxu0 }
 0x197   : > { %v598_v25 = vadd.f32 %v597_v23, %v516_v28 }
 0x198   : > { %600 = vst [vmem:[%s224_s29] sm:$0xff] %v596_v5 }
 0x199   : > { %601 = vst [vmem:[%s224_s29 + $0x8] sm:$0xff] %v598_v25 }
 0x19a PF: > { %s15_s18 = sadd.s32 1, %s701_s18  }
 0x19b   : > { %p12_p4 = scmp.ge.s32.totalorder %s15_s18, 4  }
 0x19d   :  { %14 = sbr.rel (!%p12_p4) target bundleno = 1 (0x1), region = 70 }

</bundles_post_ra>
